<compile_context>
chip_gen: v6e
topology: v6e:2x2x1
jax: 0.10.0
libtpu: 0.0.40
codegen_flags: <defaults>
</compile_context>

<pallas_src>
import jax
import jax.numpy as jnp
from jax.experimental import pallas as pl
from jax.experimental.pallas import tpu as pltpu


# ----------------------------------------------------------------------------
# Kernel: relu(x @ W1 + b1) @ W2 + b2 for one batch tile.
# ----------------------------------------------------------------------------
def _my_sequential_kernel(x_ref, w1_ref, b1_ref, w2_ref, b2_ref, o_ref):
    # child 0: nn.Linear(d_in, H) -- feed the MXU in the weight dtype (bf16 by
    # default), accumulate in f32.
    x = x_ref[...].astype(w1_ref.dtype)
    h = jnp.dot(x, w1_ref[...], preferred_element_type=jnp.float32)
    h = h + b1_ref[...]                       # b1 stored f32: f32 bias add
    # child 1: nn.ReLU() -- f32 elementwise (v5e-safe)
    h = jnp.maximum(h, 0.0)
    # child 2: nn.Linear(H, d_out_padded) -- downcast h only right before the dot
    out = jnp.dot(h.astype(w2_ref.dtype), w2_ref[...],
                  preferred_element_type=jnp.float32)
    out = out + b2_ref[...]                   # b2 stored f32
    o_ref[...] = out.astype(o_ref.dtype)


# ----------------------------------------------------------------------------
# One-time parameter preparation (do this OUTSIDE the per-call path).
# ----------------------------------------------------------------------------
def prepare_params(w1, b1, w2, b2, *, compute_dtype=jnp.bfloat16):
    """Pad W2/b2 to a lane-dense (multiple-of-128) width and cast weights.

    Returns (w1c, b1f, w2p, b2p, d_out).  Biases are always kept in f32 so the
    in-kernel bias add / ReLU stay on the f32 VPU path.
    """
    d_out = w2.shape[1]
    n_pad = (-d_out) % 128
    w2p = jnp.pad(w2, ((0, 0), (0, n_pad)))                 # zero pad columns
    b2p = jnp.pad(b2.reshape(1, -1), ((0, 0), (0, n_pad)))
    b1f = b1.reshape(1, -1).astype(jnp.float32)
    b2p = b2p.astype(jnp.float32)
    if compute_dtype is not None:
        w1 = w1.astype(compute_dtype)
        w2p = w2p.astype(compute_dtype)
    return (w1, b1f, w2p, b2p, d_out)


# ----------------------------------------------------------------------------
# Forward wrapper.
# ----------------------------------------------------------------------------
def my_sequential_forward(x, params, *, tile_b=256, out_dtype=None,
                          return_padded=False):
    """relu(x @ W1 + b1) @ W2 + b2 in a single batch-tiled pallas_call.

    x       : [B, D_in]
    params  : output of prepare_params()
    tile_b  : batch tile size.  Use tile_b >= B (grid=1) on single-TC chips
              (v5e/v6e); use tile_b = B/2 (grid=2) to feed both TensorCores on
              v7x.  Never make it tiny -- per-grid-step overhead dominates.
    out_dtype      : output dtype (default: x.dtype).  bf16 halves writeback.
    return_padded  : if True, return the lane-dense [B, d_out_padded] array and
                     skip the post-call column slice (fastest path).
    """
    w1, b1, w2p, b2p, d_out = params
    B, d_in = x.shape
    H = w1.shape[1]
    d_out_p = w2p.shape[1]
    out_dtype = x.dtype if out_dtype is None else out_dtype

    # --- batch tiling: few, large, sublane-aligned tiles ----------------------
    if tile_b >= B:
        tile_b = B                                  # grid = 1, no partial tiles
    else:
        align = 16 if w1.dtype == jnp.bfloat16 else 8   # bf16 packs 2 rows/sublane
        tile_b = max(align, (tile_b // align) * align)
    grid = (pl.cdiv(B, tile_b),)

    out_padded = pl.pallas_call(
        _my_sequential_kernel,
        out_shape=jax.ShapeDtypeStruct((B, d_out_p), out_dtype),
        grid=grid,
        in_specs=[
            # streamed, double-buffered per-tile input
            pl.BlockSpec((tile_b, d_in), lambda i: (i, 0)),
            # weights / biases: constant block index -> VMEM-resident across steps
            pl.BlockSpec((d_in, H), lambda i: (0, 0)),
            pl.BlockSpec((1, H), lambda i: (0, 0)),
            pl.BlockSpec((H, d_out_p), lambda i: (0, 0)),
            pl.BlockSpec((1, d_out_p), lambda i: (0, 0)),
        ],
        # lane-dense output block (multiple of 128 lanes -> unmasked vst)
        out_specs=pl.BlockSpec((tile_b, d_out_p), lambda i: (i, 0)),
        compiler_params=pltpu.CompilerParams(
            # batch tiles are independent -> shard across both TCs on v7x
            dimension_semantics=("parallel",),
        ),
    )(x, w1, b1, w2p, b2p)

    if return_padded:
        # Consumer accepts the lane-padded output: no extra HBM slice pass.
        return out_padded
    return out_padded[:, :d_out]


# ----------------------------------------------------------------------------
# Deterministic init mimicking nn.Linear defaults: U(-1/sqrt(fan_in), +).
# ----------------------------------------------------------------------------
def init_params(key, d_in=20, d_hidden=256, d_out=10, dtype=jnp.float32):
    k1, k2, k3, k4 = jax.random.split(key, 4)
    lim1 = 1.0 / (d_in ** 0.5)
    lim2 = 1.0 / (d_hidden ** 0.5)
    w1 = jax.random.uniform(k1, (d_in, d_hidden), dtype, -lim1, lim1)
    b1 = jax.random.uniform(k2, (1, d_hidden), dtype, -lim1, lim1)
    w2 = jax.random.uniform(k3, (d_hidden, d_out), dtype, -lim2, lim2)
    b2 = jax.random.uniform(k4, (1, d_out), dtype, -lim2, lim2)
    return w1, b1, w2, b2


if __name__ == "__main__":
    key = jax.random.PRNGKey(0)
    k_x, k_p = jax.random.split(key)

    # Small shapes consistent with the module (20 -> 256 -> 10).
    B, D_IN, D_HID, D_OUT = 64, 20, 256, 10
    x = jax.random.normal(k_x, (B, D_IN), jnp.float32)
    w1, b1, w2, b2 = init_params(k_p, D_IN, D_HID, D_OUT)

    # Pure-JAX reference
    ref = jnp.maximum(x @ w1 + b1, 0.0) @ w2 + b2

    # --- default path: bf16-fed MXU, one-time param prep, grid=1 -------------
    params_bf16 = prepare_params(w1, b1, w2, b2)            # pad + bf16 cast once
    out = my_sequential_forward(x, params_bf16, tile_b=B)   # grid = 1
    out = jax.block_until_ready(out)
    assert out.shape == (B, D_OUT)
    assert jnp.allclose(out, ref, atol=5e-2, rtol=5e-2)

    # --- f32 weights, grid=2 (both v7x TCs), lane-padded output consumed -----
    params_f32 = prepare_params(w1, b1, w2, b2, compute_dtype=None)
    out_p = my_sequential_forward(x, params_f32, tile_b=B // 2,  # grid = 2
                                  return_padded=True)
    out_p = jax.block_until_ready(out_p)
    assert out_p.shape == (B, 128)
    assert jnp.allclose(out_p[:, :D_OUT], ref, atol=1e-5, rtol=1e-5)
    assert jnp.allclose(out_p[:, D_OUT:], 0.0)               # zero-padded lanes

    print("KERNEL_OK")
</pallas_src>

<mosaic_0001>
module attributes {stable_mosaic.version = 11 : i64} {
  func.func @_my_sequential_kernel(%arg0: i32, %arg1: memref<64x20xf32, #tpu.memory_space<vmem>>, %arg2: memref<20x256xbf16, #tpu.memory_space<vmem>>, %arg3: memref<1x256xf32, #tpu.memory_space<vmem>>, %arg4: memref<256x128xbf16, #tpu.memory_space<vmem>>, %arg5: memref<1x128xf32, #tpu.memory_space<vmem>>, %arg6: memref<64x128xf32, #tpu.memory_space<vmem>>) attributes {dimension_semantics = [#tpu.dimension_semantics<parallel>], iteration_bounds = array<i64: 1>, scalar_prefetch = 0 : i64, scratch_operands = 0 : i64, tpu.core_type = #tpu.core_type<tc>, window_params = [{transform_indices = @transform_0, window_bounds = array<i64: 64, 20>}, {pipeline_mode = #tpu.pipeline_mode<synchronous>, transform_indices = @transform_1, window_bounds = array<i64: 20, 256>}, {pipeline_mode = #tpu.pipeline_mode<synchronous>, transform_indices = @transform_2, window_bounds = array<i64: 1, 256>}, {pipeline_mode = #tpu.pipeline_mode<synchronous>, transform_indices = @transform_3, window_bounds = array<i64: 256, 128>}, {pipeline_mode = #tpu.pipeline_mode<synchronous>, transform_indices = @transform_4, window_bounds = array<i64: 1, 128>}, {transform_indices = @transform_5, window_bounds = array<i64: 64, 128>}]} {
    %c0 = arith.constant 0 : index
    %c0_0 = arith.constant 0 : index
    %0 = vector.load %arg1[%c0, %c0_0] : memref<64x20xf32, #tpu.memory_space<vmem>>, vector<64x20xf32>
    %1 = arith.truncf %0 : vector<64x20xf32> to vector<64x20xbf16>
    %c0_1 = arith.constant 0 : index
    %c0_2 = arith.constant 0 : index
    %2 = vector.load %arg2[%c0_1, %c0_2] : memref<20x256xbf16, #tpu.memory_space<vmem>>, vector<20x256xbf16>
    %cst = arith.constant dense<0.000000e+00> : vector<64x256xf32>
    %3 = tpu.matmul %1, %2, %cst {dimension_numbers = #tpu.dot_dimension_numbers<[1], [0], [0], [1], [0, 0, 1, 1], [], []>} : vector<64x20xbf16>, vector<20x256xbf16>, vector<64x256xf32> -> vector<64x256xf32>
    %c0_3 = arith.constant 0 : index
    %c0_4 = arith.constant 0 : index
    %4 = vector.load %arg3[%c0_3, %c0_4] : memref<1x256xf32, #tpu.memory_space<vmem>>, vector<1x256xf32>
    %5 = vector.broadcast %4 : vector<1x256xf32> to vector<64x256xf32>
    %6 = arith.addf %3, %5 : vector<64x256xf32>
    %cst_5 = arith.constant 0.000000e+00 : f32
    %7 = vector.broadcast %cst_5 : f32 to vector<64x256xf32>
    %8 = arith.maximumf %6, %7 : vector<64x256xf32>
    %9 = arith.truncf %8 : vector<64x256xf32> to vector<64x256xbf16>
    %c0_6 = arith.constant 0 : index
    %c0_7 = arith.constant 0 : index
    %10 = vector.load %arg4[%c0_6, %c0_7] : memref<256x128xbf16, #tpu.memory_space<vmem>>, vector<256x128xbf16>
    %cst_8 = arith.constant dense<0.000000e+00> : vector<64x128xf32>
    %11 = tpu.matmul %9, %10, %cst_8 {dimension_numbers = #tpu.dot_dimension_numbers<[1], [0], [0], [1], [0, 0, 1, 1], [], []>} : vector<64x256xbf16>, vector<256x128xbf16>, vector<64x128xf32> -> vector<64x128xf32>
    %c0_9 = arith.constant 0 : index
    %c0_10 = arith.constant 0 : index
    %12 = vector.load %arg5[%c0_9, %c0_10] : memref<1x128xf32, #tpu.memory_space<vmem>>, vector<1x128xf32>
    %13 = vector.broadcast %12 : vector<1x128xf32> to vector<64x128xf32>
    %14 = arith.addf %11, %13 : vector<64x128xf32>
    %c0_11 = arith.constant 0 : index
    %c0_12 = arith.constant 0 : index
    %15 = vector.load %arg6[%c0_11, %c0_12] : memref<64x128xf32, #tpu.memory_space<vmem>>, vector<64x128xf32>
    tpu.vector_store %arg6[%c0_11, %c0_12], %14 {strides = array<i32>} : memref<64x128xf32, #tpu.memory_space<vmem>>, vector<64x128xf32>,
    return
  }
  func.func @transform_0(%arg0: i32) -> (i32, i32) {
    %c0_i32 = arith.constant 0 : i32
    %c0_i32_0 = arith.constant 0 : i32
    return %arg0, %c0_i32 : i32, i32
  }
  func.func @transform_1(%arg0: i32) -> (i32, i32) {
    %c0_i32 = arith.constant 0 : i32
    %c0_i32_0 = arith.constant 0 : i32
    %c0_i32_1 = arith.constant 0 : i32
    return %c0_i32, %c0_i32_0 : i32, i32
  }
  func.func @transform_2(%arg0: i32) -> (i32, i32) {
    %c0_i32 = arith.constant 0 : i32
    %c0_i32_0 = arith.constant 0 : i32
    %c0_i32_1 = arith.constant 0 : i32
    return %c0_i32, %c0_i32_0 : i32, i32
  }
  func.func @transform_3(%arg0: i32) -> (i32, i32) {
    %c0_i32 = arith.constant 0 : i32
    %c0_i32_0 = arith.constant 0 : i32
    %c0_i32_1 = arith.constant 0 : i32
    return %c0_i32, %c0_i32_0 : i32, i32
  }
  func.func @transform_4(%arg0: i32) -> (i32, i32) {
    %c0_i32 = arith.constant 0 : i32
    %c0_i32_0 = arith.constant 0 : i32
    %c0_i32_1 = arith.constant 0 : i32
    return %c0_i32, %c0_i32_0 : i32, i32
  }
  func.func @transform_5(%arg0: i32) -> (i32, i32) {
    %c0_i32 = arith.constant 0 : i32
    %c0_i32_0 = arith.constant 0 : i32
    return %arg0, %c0_i32 : i32, i32
  }
}

</mosaic_0001>

<bundles_post_ra>
// kernel: tpu_custom_call.1
= control target key start
LH: loop header
LB: loop body
LE: loop exit
PB: predicated region body
PF: predicated region fallthrough
CT: control target
= control target key end

     0   :  { %10 = vsyncpa [#allocation3], 0  ;;  %s660_s0 = inlined_call_operand.vmem [shape: f32[64,20], index: 0, kind: input, shape index: {}]   ;;  %s661_s1 = inlined_call_operand.vmem [shape: bf16[20,256], index: 1, kind: input, shape index: {}]   ;;  %s662_s2 = inlined_call_operand.vmem [shape: f32[1,256], index: 2, kind: input, shape index: {}]   ;;  %s663_s3 = inlined_call_operand.hbm [shape: bf16[256,128], index: 3, kind: input, shape index: {}]   ;;  %s664_s4 = inlined_call_operand.vmem [shape: f32[1,128], index: 4, kind: input, shape index: {}]   ;;  %s665_s5 = inlined_call_operand.hbm [shape: f32[64,128], index: 5, kind: output, shape index: {}]  }
   0x1   :  { %11 = vsyncpa [#allocation4], 0  ;;  %s574_s18 = smov [#allocation2]  }
   0x2   :  { %s23_s19 = sshll.u32 %s574_s18, 4  ;;  %s24_s19 = int_to_ptr.vmem [resolvable:$true] %s23_s19 }
   0x3   :  { %s538_s20 = scalar_lea.vmem %s24_s19, 2048  ;;  %p543_p1 = scmp.lt.s32.totalorder %s24_s19, %s24_s19 }
   0x4   :  { %p539_p0 = scmp.ne.s32.totalorder %s24_s19, %s538_s20  ;;  %p544_p2 = scmp.lt.s32.totalorder %s538_s20, %s538_s20 }
   0x6   :  { %p545_p3 = por %p544_p2, %p543_p1 }
   0x8   :  { %p546_p4 = pnand %p545_p3, %p539_p0 }
   0xa   :  { %549 = shalt.err (!%p546_p4)
}
   0xb   :  { %s575_s21 = smov 64   ;;  %s576_s22 = smov 4  }
   0xc   :  { %29 = dma.hbm_to_vmem [thread:$0]  %s663_s3, 2048, %s24_s19, [#allocation3], %s575_s21, %s575_s21, %s576_s22  }
   0xd   :  { %570 = dma.done.wait [#allocation3], 2048  }
   0xe   :  { %571 = vsyncadd [#allocation3], 4294965248  ;;  %v577_v0 = vmov 0   ;;  %v50_v1 = vld [vmem:[%s661_s1 + $0x10] sm:$0x33]  ;;  %vm91_vm0 = vcmask 1041408   ;;  %v53_v35 = vlaneseq }
   0xf   :  { %130 = vmatprep.mubr.bf16.mxu0 %v577_v0  ;;  %v423_v2 = vcombine.high %v50_v1, %v50_v1  ;;  %v422_v3 = vcombine.low %v50_v1, %v50_v1  ;;  %v511_v4 = vld [vmem:[%s661_s1 + $0x4] ss:$8 sps:$4 sm:$0xff]   ;;  %v513_v6 = vld [vmem:[%s661_s1] ss:$8 sps:$4 sm:$0xff]   ;;  %v514_v9 = vld [vmem:[#allocation2 + $0x78] sm:$0xff]   ;;  %vm78_vm1 = vcmask 162816  }
  0x10   :  { %v36_v7 = vld [vmem:[%s660_s0] sm:$0xff]  ;;  %v37_v8 = vld [vmem:[%s660_s0 + $0x8] sm:$0xff]  ;;  %v515_v10 = vld [vmem:[#allocation2 + $0x38] sm:$0xff]   ;;  %486 = vmatprep.subr.bf16.mxu1 %v514_v9  ;;  %v54_v36 = vshrl.u32 %v53_v35, 7 }
  0x11   :  { %424 = vmatprep.subr.msk.bf16.mxu0 %vm91_vm0, %v423_v2  ;;  %v93_v5 = vsel %vm91_vm0, %v422_v3, 0  ;;  %v44_v11 = vpack.c.bf16 %v37_v8, %v36_v7  ;;  %v516_v12 = vld [vmem:[#allocation2 + $0x70] sm:$0xff]   ;;  %494 = vmatpush3.bf16.msra.mxu1 %v515_v10  ;;  %v39_v14 = vld [vmem:[%s660_s0 + $0x18] sm:$0xff]  ;;  %v518_v16 = vld [vmem:[#allocation2 + $0x68] sm:$0xff]  }
  0x12   :  { %111 = vmatpush1.bf16.msra.mxu0 %v93_v5  ;;  %487 = vmatprep.subr.bf16.mxu1 %v516_v12  ;;  %v38_v13 = vld [vmem:[%s660_s0 + $0x10] sm:$0xff]  ;;  %v519_v17 = vld [vmem:[#allocation2 + $0x28] sm:$0xff]   ;;  %v520_v18 = vld [vmem:[#allocation2 + $0x60] sm:$0xff]   ;;  %v59_v37 = vsub.s32 1, %v54_v36  ;;  %v55_v38 = vsub.s32 0, %v54_v36 }
  0x13   :  { %112 = vmatprep.subr.bf16.mxu0 %v511_v4  ;;  %v517_v15 = vld [vmem:[#allocation2 + $0x30] sm:$0xff]   ;;  %v45_v19 = vpack.c.bf16 %v39_v14, %v38_v13  ;;  %v521_v20 = vld [vmem:[#allocation2 + $0x20] sm:$0xff]   ;;  %v41_v22 = vld [vmem:[%s660_s0 + $0x28] sm:$0xff] }
  0x14   :  { %v40_v21 = vld [vmem:[%s660_s0 + $0x20] sm:$0xff]  ;;  %v522_v23 = vld [vmem:[#allocation2 + $0x58] sm:$0xff]   ;;  %v42_v26 = vld [vmem:[%s660_s0 + $0x30] sm:$0xff] }
  0x15   :  { %495 = vmatpush3.bf16.msra.mxu1 %v517_v15  ;;  %v46_v24 = vpack.c.bf16 %v41_v22, %v40_v21  ;;  %v523_v25 = vld [vmem:[#allocation2 + $0x18] sm:$0xff]   ;;  %v524_v29 = vld [vmem:[#allocation2 + $0x50] sm:$0xff]   ;;  %v526_v31 = vld [vmem:[#allocation2 + $0x48] sm:$0xff]  }
  0x16   :  { %113 = vmatpush1.bf16.msra.mxu0 %v513_v6  ;;  %488 = vmatprep.subr.bf16.mxu1 %v518_v16  ;;  %v43_v27 = vld [vmem:[%s660_s0 + $0x38] sm:$0xff]  ;;  %v525_v30 = vld [vmem:[#allocation2 + $0x10] sm:$0xff]   ;;  %v527_v32 = vld [vmem:[#allocation2 + $0x8] sm:$0xff]  }
  0x17   :  { %446 = vmatprep.subr.bf16.mxu0 %v514_v9  ;;  %v47_v28 = vpack.c.bf16 %v43_v27, %v42_v26  ;;  %v528_v33 = vld [vmem:[#allocation2 + $0x40] sm:$0xff]  }
  0x18   :  { %v529_v34 = vld [vmem:[#allocation2] sm:$0xff]  }
  0x19   :  { %425 = vmatmul.mubr.msk.bf16.vlgmr.msra.gmra.mxu0 %vm78_vm1, %v44_v11  ;;  %496 = vmatpush3.bf16.msra.mxu1 %v519_v17  ;;  %v51_v39 = vld [vmem:[%s662_s2] sm:$0x3] }
  0x1a   :  { %140 = vmatprep.mubr.bf16.mxu0 %v577_v0  ;;  %447 = vmatpush3.bf16.msra.mxu0 %v515_v10  ;;  %v60_v41 = vrot.slane %v51_v39, %v59_v37  ;;  %v56_v42 = vrot.slane %v51_v39, %v55_v38  ;;  %v429_v35 = vld [vmem:[%s664_s4] ss:$0 sm:$0xff]  ;;  %s578_s4 = smov [#allocation5]  }
  0x1b   :  { %448 = vmatprep.subr.bf16.mxu0 %v516_v12  ;;  %489 = vmatprep.subr.bf16.mxu1 %v520_v18  ;;  %s408_s22 = sshll.u32 %s578_s4, 4  ;;  %s409_s22 = int_to_ptr.vmem [resolvable:$true] %s408_s22 }
  0x1c   :  { %s550_s23 = scalar_lea.vmem %s409_s22, 1024  ;;  %p555_p6 = scmp.lt.s32.totalorder %s409_s22, %s409_s22 }
  0x1d   :  { %497 = vmatpush3.bf16.msra.mxu1 %v521_v20  ;;  %p551_p5 = scmp.ne.s32.totalorder %s409_s22, %s550_s23  ;;  %p556_p7 = scmp.lt.s32.totalorder %s550_s23, %s550_s23 }
  0x1e   :  { %449 = vmatpush3.bf16.msra.mxu0 %v517_v15  ;;  %490 = vmatprep.subr.bf16.mxu1 %v522_v23 }
  0x1f   :  { %450 = vmatprep.subr.bf16.mxu0 %v518_v16  ;;  %p557_p8 = por %p556_p7, %p555_p6 }
  0x21   :  { %426 = vmatmul.mubr.msk.bf16.gmra.mxu0 %vm78_vm1, %v45_v19  ;;  %498 = vmatpush3.bf16.msra.mxu1 %v523_v25  ;;  %p558_p9 = pnand %p557_p8, %p551_p5 }
  0x22   :  { %150 = vmatprep.mubr.bf16.mxu0 %v577_v0  ;;  %451 = vmatpush3.bf16.msra.mxu0 %v519_v17 }
  0x23   :  { %452 = vmatprep.subr.bf16.mxu0 %v520_v18  ;;  %491 = vmatprep.subr.bf16.mxu1 %v524_v29 }
  0x25   :  { %499 = vmatpush3.bf16.msra.mxu1 %v525_v30 }
  0x26   :  { %453 = vmatpush3.bf16.msra.mxu0 %v521_v20  ;;  %492 = vmatprep.subr.bf16.mxu1 %v526_v31 }
  0x27   :  { %454 = vmatprep.subr.bf16.mxu0 %v522_v23 }
  0x29   :  { %427 = vmatmul.mubr.msk.bf16.gmra.mxu0 %vm78_vm1, %v46_v24  ;;  %500 = vmatpush3.bf16.msra.mxu1 %v527_v32 }
  0x2a   :  { %160 = vmatprep.mubr.bf16.mxu0 %v577_v0  ;;  %455 = vmatpush3.bf16.msra.mxu0 %v523_v25 }
  0x2b   :  { %456 = vmatprep.subr.bf16.mxu0 %v524_v29  ;;  %493 = vmatprep.subr.bf16.mxu1 %v528_v33 }
  0x2d   :  { %501 = vmatpush3.bf16.msra.mxu1 %v529_v34 }
  0x2e   :  { %457 = vmatpush3.bf16.msra.mxu0 %v525_v30 }
  0x2f   :  { %458 = vmatprep.subr.bf16.mxu0 %v526_v31 }
  0x31   :  { %428 = vmatmul.mubr.msk.bf16.gmra.mxu0 %vm78_vm1, %v47_v28 }
  0x32   :  { %459 = vmatpush3.bf16.msra.mxu0 %v527_v32 }
  0x33   :  { %460 = vmatprep.subr.bf16.mxu0 %v528_v33 }
  0x36   :  { %461 = vmatpush3.bf16.msra.mxu0 %v529_v34 }
  0xd9   :  { %v132_v40 = vpop.f32.mrf.mxu0 }
  0xda   :  { %v133_v47 = vadd.f32 %v132_v40, %v56_v42 }
  0xdb   :  { %v134_v43 = vpop.f32.mrf.mxu0 }
  0xdc   :  { %v135_v45 = vadd.f32 %v134_v43, %v60_v41  ;;  %v171_v54 = vmax.f32 %v133_v47, 0.0 }
  0xdd   :  { %v136_v44 = vpop.f32.mrf.mxu0 }
  0xde   :  { %v137_v46 = vadd.f32 %v136_v44, %v56_v42  ;;  %v172_v52 = vmax.f32 %v135_v45, 0.0 }
  0xdf   :  { %v138_v48 = vpop.f32.mrf.mxu0 }
  0xe0   :  { %v139_v49 = vadd.f32 %v138_v48, %v60_v41  ;;  %v173_v50 = vmax.f32 %v137_v46, 0.0 }
  0xe1   :  { %v142_v51 = vpop.f32.mrf.mxu0 }
  0xe2   :  { %v174_v53 = vmax.f32 %v139_v49, 0.0  ;;  %v187_v57 = vpack.c.bf16 %v173_v50, %v171_v54  ;;  %v143_v61 = vadd.f32 %v142_v51, %v56_v42 }
  0xe3   :  { %v144_v55 = vpop.f32.mrf.mxu0 }
  0xe4   :  { %v188_v56 = vpack.c.bf16 %v174_v53, %v172_v52  ;;  %v145_v59 = vadd.f32 %v144_v55, %v60_v41  ;;  %v175_v4 = vmax.f32 %v143_v61, 0.0 }
  0xe5   :  { %v146_v58 = vpop.f32.mrf.mxu0 }
  0xe6   :  { %v147_v60 = vadd.f32 %v146_v58, %v56_v42  ;;  %362 = vmatprep.mubr.bf16.mxu0 %v188_v56  ;;  %v176_v2 = vmax.f32 %v145_v59, 0.0 }
  0xe7   :  { %v148_v62 = vpop.f32.mrf.mxu0  ;;  %363 = vmatmul.mubr.bf16.vlgmr.msra.gmra.mxu0 %v187_v57 }
  0xe8   :  { %v149_v63 = vadd.f32 %v148_v62, %v60_v41  ;;  %v177_v0 = vmax.f32 %v147_v60, 0.0 }
  0xe9   :  { %v152_v1 = vpop.f32.mrf.mxu0 }
  0xea   :  { %v178_v3 = vmax.f32 %v149_v63, 0.0  ;;  %v189_v7 = vpack.c.bf16 %v177_v0, %v175_v4  ;;  %v153_v11 = vadd.f32 %v152_v1, %v56_v42 }
  0xeb   :  { %v154_v5 = vpop.f32.mrf.mxu0 }
  0xec   :  { %v190_v6 = vpack.c.bf16 %v178_v3, %v176_v2  ;;  %v155_v9 = vadd.f32 %v154_v5, %v60_v41  ;;  %v179_v18 = vmax.f32 %v153_v11, 0.0 }
  0xed   :  { %v156_v8 = vpop.f32.mrf.mxu0 }
  0xee   :  { %v157_v10 = vadd.f32 %v156_v8, %v56_v42  ;;  %370 = vmatprep.mubr.bf16.mxu1 %v190_v6  ;;  %v180_v16 = vmax.f32 %v155_v9, 0.0 }
  0xef   :  { %v158_v12 = vpop.f32.mrf.mxu0  ;;  %371 = vmatmul.mubr.bf16.vlgmr.msra.gmra.mxu1 %v189_v7 }
  0xf0   :  { %v159_v13 = vadd.f32 %v158_v12, %v60_v41  ;;  %v181_v14 = vmax.f32 %v157_v10, 0.0 }
  0xf1   :  { %v162_v15 = vpop.f32.mrf.mxu0 }
  0xf2   :  { %v182_v17 = vmax.f32 %v159_v13, 0.0  ;;  %v191_v21 = vpack.c.bf16 %v181_v14, %v179_v18  ;;  %v163_v25 = vadd.f32 %v162_v15, %v56_v42 }
  0xf3   :  { %v164_v19 = vpop.f32.mrf.mxu0 }
  0xf4   :  { %v192_v20 = vpack.c.bf16 %v182_v17, %v180_v16  ;;  %v165_v23 = vadd.f32 %v164_v19, %v60_v41  ;;  %v183_v31 = vmax.f32 %v163_v25, 0.0 }
  0xf5   :  { %v166_v22 = vpop.f32.mrf.mxu0 }
  0xf6   :  { %v167_v24 = vadd.f32 %v166_v22, %v56_v42  ;;  %378 = vmatprep.mubr.bf16.mxu1 %v192_v20  ;;  %v184_v29 = vmax.f32 %v165_v23, 0.0 }
  0xf7   :  { %v168_v26 = vpop.f32.mrf.mxu0  ;;  %379 = vmatmul.mubr.bf16.gmra.mxu1 %v191_v21 }
  0xf8   :  { %v169_v27 = vadd.f32 %v168_v26, %v60_v41  ;;  %v185_v28 = vmax.f32 %v167_v24, 0.0 }
  0xfa   :  { %v186_v30 = vmax.f32 %v169_v27, 0.0  ;;  %v193_v33 = vpack.c.bf16 %v185_v28, %v183_v31 }
  0xfc   :  { %v194_v32 = vpack.c.bf16 %v186_v30, %v184_v29 }
  0xfe   :  { %386 = vmatprep.mubr.bf16.mxu1 %v194_v32 }
  0xff   :  { %387 = vmatmul.mubr.bf16.gmra.mxu1 %v193_v33 }
 0x1a7   :  { %v462_v34 = vpop.f32.mrf.mxu0 }
 0x1a9   :  { %v463_v36 = vpop.f32.mrf.mxu0 }
 0x1aa   :  { %v464_v37 = vadd.f32 %v463_v36, %v462_v34 }
 0x1ab   :  { %v465_v38 = vpop.f32.mrf.mxu0 }
 0x1ac   :  { %v365_v39 = vadd.f32 %v464_v37, %v429_v35 }
 0x1ad   :  { %v466_v40 = vpop.f32.mrf.mxu0 }
 0x1ae   :  { %395 = vst [vmem:[#allocation5] sm:$0xff] %v365_v39  ;;  %v467_v41 = vadd.f32 %v466_v40, %v465_v38 }
 0x1af   :  { %v468_v42 = vpop.f32.mrf.mxu1 }
 0x1b0   :  { %v368_v43 = vadd.f32 %v467_v41, %v429_v35 }
 0x1b1   :  { %v469_v44 = vpop.f32.mrf.mxu1 }
 0x1b2   :  { %396 = vst [vmem:[#allocation5 + $0x8] sm:$0xff] %v368_v43  ;;  %v470_v45 = vadd.f32 %v469_v44, %v468_v42 }
 0x1b3   :  { %v471_v46 = vpop.f32.mrf.mxu1 }
 0x1b4   :  { %v373_v47 = vadd.f32 %v470_v45, %v429_v35 }
 0x1b5   :  { %v472_v48 = vpop.f32.mrf.mxu1 }
 0x1b6   :  { %397 = vst [vmem:[#allocation5 + $0x10] sm:$0xff] %v373_v47  ;;  %v473_v49 = vadd.f32 %v472_v48, %v471_v46 }
 0x1b7   :  { %v474_v50 = vpop.f32.mrf.mxu1 }
 0x1b8   :  { %v376_v51 = vadd.f32 %v473_v49, %v429_v35 }
 0x1b9   :  { %v475_v52 = vpop.f32.mrf.mxu1 }
 0x1ba   :  { %398 = vst [vmem:[#allocation5 + $0x18] sm:$0xff] %v376_v51  ;;  %v476_v53 = vadd.f32 %v475_v52, %v474_v50 }
 0x1bb   :  { %v477_v54 = vpop.f32.mrf.mxu1 }
 0x1bc   :  { %v381_v55 = vadd.f32 %v476_v53, %v429_v35 }
 0x1bd   :  { %v478_v56 = vpop.f32.mrf.mxu1 }
 0x1be   :  { %399 = vst [vmem:[#allocation5 + $0x20] sm:$0xff] %v381_v55  ;;  %v479_v57 = vadd.f32 %v478_v56, %v477_v54 }
 0x1bf   :  { %v480_v58 = vpop.f32.mrf.mxu1 }
 0x1c0   :  { %v384_v59 = vadd.f32 %v479_v57, %v429_v35 }
 0x1c1   :  { %v481_v60 = vpop.f32.mrf.mxu1 }
 0x1c2   :  { %400 = vst [vmem:[#allocation5 + $0x28] sm:$0xff] %v384_v59  ;;  %v482_v61 = vadd.f32 %v481_v60, %v480_v58 }
 0x1c3   :  { %v483_v62 = vpop.f32.mrf.mxu1 }
 0x1c4   :  { %v389_v63 = vadd.f32 %v482_v61, %v429_v35 }
 0x1c5   :  { %v484_v0 = vpop.f32.mrf.mxu1 }
 0x1c6   :  { %401 = vst [vmem:[#allocation5 + $0x30] sm:$0xff] %v389_v63  ;;  %v485_v1 = vadd.f32 %v484_v0, %v483_v62 }
 0x1c8   :  { %v392_v2 = vadd.f32 %v485_v1, %v429_v35 }
 0x1ca   :  { %402 = vst [vmem:[#allocation5 + $0x38] sm:$0xff] %v392_v2 }
 0x1cb   :  { %561 = shalt.err (!%p558_p9)
}
 0x1cc   :  { %s579_s24 = smov 128   ;;  %s580_s25 = smov 8  }
 0x1cd   :  { %414 = dma.vmem_to_hbm [thread:$0]  %s409_s22, 1024, %s665_s5, [#allocation4], %s579_s24, %s579_s24, %s580_s25  }
 0x1ce   :  { %572 = dma.done.wait [#allocation4], 1024  }
 0x1cf   :  { %573 = vsyncadd [#allocation4], 4294966272 }
 0x1d0   :  { %418 = vsyncpa [#allocation3], 1 }
 0x1d1   :  { %419 = vsyncpa [#allocation4], 1 }

</bundles_post_ra>
